<compile_context>
chip_gen: v7x
topology: tpu7x:2x2x1
jax: 0.10.0
libtpu: 0.0.40
codegen_flags: <defaults>
</compile_context>

<pallas_src>
import functools

import jax
import jax.numpy as jnp
from jax.experimental import pallas as pl
from jax.experimental.pallas import tpu as pltpu

_LANES = 128


def _seq_ce_kernel(x_ref, tgt_ref, out_ref, *, use_mxu):
    """One row-tile: row-wise log-softmax, pick target logit, masked partial sum.

    x_ref   : (TM, C)     logits tile, original dtype (f32 cast only where needed)
    tgt_ref : (TM, 1)     int32 target class per row; -1 marks invalid/padded rows
    out_ref : (1, 1, 128) f32 per-tile partial sum (scalar splat across lanes)
    """
    x = x_ref[...]                                   # (TM, C) native dtype
    tgt = tgt_ref[...]                               # (TM, 1) int32
    valid = tgt >= 0                                 # seq-mask + padded/ragged rows

    # Row max / shift in the native dtype (bf16 VPU ops process 2x elements per
    # slot on v6e/v7x and halve the VMEM traffic of these passes).
    m = jnp.max(x, axis=-1, keepdims=True)           # (TM, 1)
    xm = x - m                                       # (TM, C), <= 0 for valid data

    # One-hot select of the (shifted) target logit; only one nonzero per row so
    # native-dtype accumulation of it is exact.
    # TODO(synk): out-of-range target ids (>= C) silently yield picked = 0 (the
    # row then contributes lse); PyTorch's gather would raise instead.
    col = jax.lax.broadcasted_iota(jnp.int32, x.shape, 1)
    sel = jnp.where(col == tgt, xm, 0.0)             # (TM, C) native dtype

    # Softmax denominator must be accumulated in f32; cast only (x - m).
    e = jnp.exp(xm.astype(jnp.float32))              # (TM, C) f32 (exp on EUP)

    if use_mxu:
        # Offload the two lane-axis sums to the otherwise-idle MXU via a
        # ones-vector matmul: frees ~2 VALU adds/element, which is what makes
        # bf16 logits VALU-bound on v6e/v7x.  `sel` has a single nonzero per
        # row, so a single-pass native-dtype matmul is exact for `picked`.
        ones_f32 = jnp.ones((x.shape[-1], _LANES), jnp.float32)
        ones_nat = jnp.ones((x.shape[-1], _LANES), x.dtype)
        sum_e = jnp.dot(e, ones_f32, preferred_element_type=jnp.float32)[:, :1]
        picked = jnp.dot(sel, ones_nat, preferred_element_type=jnp.float32)[:, :1]
    else:
        # f32 logits: plain XLU/VALU reductions keep exact f32 accumulation and
        # the kernel is HBM-bound on v5e/v6e anyway (VALU slack to spare).
        sum_e = jnp.sum(e, axis=-1, keepdims=True)    # (TM, 1) f32
        picked = jnp.sum(sel, axis=-1, keepdims=True) # (TM, 1) native dtype

    # -log_softmax(x)[row, tgt] = lse - x[tgt] = log(sum_e) - (x[tgt] - m).
    # Invalid rows (tgt == -1), including garbage rows of a partially
    # out-of-bounds last tile, are zeroed here (NaN/Inf safe: where selects).
    row_loss = jnp.where(valid, jnp.log(sum_e) - picked.astype(jnp.float32), 0.0)
    out_ref[...] = jnp.broadcast_to(jnp.sum(row_loss), (1, 1, _LANES))


def _round_up(x, m):
    return ((x + m - 1) // m) * m


def _vmem_capacity_bytes():
    """Physical VMEM of the attached TPU (v5e/v6e: 128 MiB, v7x: 64 MiB)."""
    try:
        cap = getattr(pltpu.get_tpu_info(), "vmem_capacity_bytes", None)
        if cap:
            return int(cap)
    except Exception:
        pass
    return 64 * 1024 * 1024        # conservative fallback (v7x-sized)


def _per_row_vmem_bytes(n_classes, itemsize):
    """Approximate VMEM bytes needed per tile row (matches _seq_ce_kernel)."""
    return (2 * n_classes * itemsize      # logits tile, double-buffered (native dtype)
            + 2 * n_classes * itemsize    # native-dtype temporaries: x - m, one-hot select
            + 4 * n_classes * 4           # f32/i32 temporaries: exp, lane iota, masks, slack
            + 2 * _LANES * 4              # int32 target column, lane-padded to 128, x2 buffers
            + 2 * _LANES * 4)             # the two (TM, 128) per-row reduction results


def _pick_block_rows(n_rows, per_row_bytes, vmem_capacity):
    """Largest row-tile whose full working set fits in ~55% of physical VMEM."""
    budget = (vmem_capacity * 11) // 20
    rows = max(32, budget // per_row_bytes)
    # Keep >= 2 grid tiles whenever possible so the "parallel" grid axis can be
    # split across v7x's two TensorCores (free on single-TC v5e/v6e).
    rows = min(rows, _round_up(pl.cdiv(n_rows, 2), 32))
    # Multiple of 32 rows satisfies the sublane min-tile for f32/bf16/int8 alike.
    return max(32, (rows // 32) * 32)


def sequence_cross_entropy_loss(logits, target, length,
                                sequence_normalize=False,
                                sample_normalize=True,
                                block_rows=None,
                                use_mxu_reductions=None):
    """Pallas-TPU forward pass of SequenceCrossEntropyLoss."""
    assert not (sequence_normalize and sample_normalize), (
        "Both sequence_normalize and sample_normalize cannot be True.")
    B, T, C = logits.shape
    N = B * T
    itemsize = jnp.dtype(logits.dtype).itemsize

    vmem_cap = _vmem_capacity_bytes()
    per_row = _per_row_vmem_bytes(C, itemsize)
    if block_rows is None:
        block_rows = _pick_block_rows(N, per_row, vmem_cap)
    if use_mxu_reductions is None:
        # Sub-32-bit logits (bf16, ...) are VALU-bound on v6e/v7x: route the
        # lane sums through the MXU.  f32 logits stay on the exact sum path.
        use_mxu_reductions = logits.dtype != jnp.float32
    n_tiles = pl.cdiv(N, block_rows)

    # Computed scoped-VMEM limit: actual working set + slack, capped at 90% of
    # physical VMEM (replaces the flat 48 MiB, which was 75% of v7x's 64 MiB).
    vmem_limit = int(min((vmem_cap * 9) // 10,
                         max(block_rows * per_row + (8 << 20), 32 << 20)))

    # Fold the validity mask into the targets: invalid / padded rows carry -1.
    # TODO(synk): if max(length) < T the PyTorch code silently gathers from
    # misaligned rows (it flattens the full (B*T, C) log-softmax but only keeps
    # B*max(length) targets); we compute the well-defined masked loss instead.
    t_idx = jax.lax.broadcasted_iota(jnp.int32, (B, T), 1)
    valid = t_idx < length.astype(jnp.int32)[:, None]
    tgt = jnp.where(valid, target.astype(jnp.int32), -1).reshape(N, 1)

    pad = n_tiles * block_rows - N
    if pad:  # pad only the tiny (N, 1) target column; the big logits stay as-is
        tgt = jnp.pad(tgt, ((0, pad), (0, 0)), constant_values=-1)

    x = logits.reshape(N, C)          # original dtype, no HBM-side copy or padding

    kernel = functools.partial(_seq_ce_kernel, use_mxu=use_mxu_reductions)
    partials = pl.pallas_call(
        kernel,
        out_shape=jax.ShapeDtypeStruct((n_tiles, 1, _LANES), jnp.float32),
        grid_spec=pltpu.PrefetchScalarGridSpec(
            num_scalar_prefetch=0,
            grid=(n_tiles,),
            in_specs=[
                pl.BlockSpec((block_rows, C), lambda i: (i, 0)),
                pl.BlockSpec((block_rows, 1), lambda i: (i, 0)),
            ],
            out_specs=pl.BlockSpec((1, 1, _LANES), lambda i: (i, 0, 0)),
        ),
        compiler_params=pltpu.CompilerParams(
            dimension_semantics=("parallel",),
            vmem_limit_bytes=vmem_limit,
        ),
    )(x, tgt)

    total = jnp.sum(partials[:, 0, 0])

    if sequence_normalize:
        total = total / jnp.sum(jnp.minimum(length, T)).astype(jnp.float32)
    if sample_normalize:
        # PyTorch: divide by target.size(0) after target[:, :max(length)].view(-1,1)
        # i.e. by B * max(length); traced max -> no host sync, jit-friendly.
        # (Division by zero if every length is 0, matching the PyTorch module.)
        total = total / (B * jnp.max(length).astype(jnp.float32))
    return total


def _reference(logits, target, length, sequence_normalize=False, sample_normalize=True):
    B, T, C = logits.shape
    mask = (jnp.arange(T)[None, :] < length[:, None]).astype(jnp.float32)
    logp = jax.nn.log_softmax(logits.reshape(B * T, C).astype(jnp.float32), axis=1)
    picked = jnp.take_along_axis(
        logp, target.reshape(B * T, 1).astype(jnp.int32), axis=1)
    out = jnp.sum(-picked * mask.reshape(B * T, 1))
    if sequence_normalize:
        out = out / jnp.sum(mask)
    if sample_normalize:
        out = out / (B * jnp.max(length).astype(jnp.float32))
    return out


if __name__ == "__main__":
    key = jax.random.PRNGKey(0)
    B, T, C = 2, 8, 32
    k1, k2, k3, k4 = jax.random.split(key, 4)

    loss_fn = jax.jit(sequence_cross_entropy_loss)  # jit-clean: no host readbacks

    # f32 logits (v5e-style path: exact XLU/VALU reductions), ragged last tile masked.
    logits = jax.random.normal(k1, (B, T, C), dtype=jnp.float32)
    target = jax.random.randint(k2, (B, T), 0, C, dtype=jnp.int32)
    length = jnp.array([8, 5], dtype=jnp.int32)     # max(length) == T
    loss = jax.block_until_ready(loss_fn(logits, target, length))
    ref = _reference(logits, target, length)
    assert jnp.allclose(loss, ref, rtol=1e-5, atol=1e-5), (loss, ref)

    # bf16 logits: exercises the MXU-offloaded reduction path (v6e/v7x route).
    Cb = 128
    logits_bf = jax.random.normal(k3, (B, T, Cb), dtype=jnp.float32).astype(jnp.bfloat16)
    target_bf = jax.random.randint(k4, (B, T), 0, Cb, dtype=jnp.int32)
    loss_bf = jax.block_until_ready(loss_fn(logits_bf, target_bf, length))
    ref_bf = _reference(logits_bf, target_bf, length)
    assert jnp.allclose(loss_bf, ref_bf, rtol=5e-2, atol=5e-2), (loss_bf, ref_bf)

    print("KERNEL_OK")
</pallas_src>

<mosaic_0001>
module attributes {stable_mosaic.version = 11 : i64} {
  func.func @_seq_ce_kernel(%arg0: i32, %arg1: memref<32x32xf32, #tpu.memory_space<vmem>>, %arg2: memref<32x1xi32, #tpu.memory_space<vmem>>, %arg3: memref<1x1x128xf32, #tpu.memory_space<vmem>>) attributes {dimension_semantics = [#tpu.dimension_semantics<parallel>], iteration_bounds = array<i64: 1>, scalar_prefetch = 0 : i64, scratch_operands = 0 : i64, tpu.core_type = #tpu.core_type<tc>, window_params = [{transform_indices = @transform_0, window_bounds = array<i64: 32, 32>}, {transform_indices = @transform_1, window_bounds = array<i64: 32, 1>}, {transform_indices = @transform_2, window_bounds = array<i64: 1, 1, 128>}]} {
    %c0 = arith.constant 0 : index
    %c0_0 = arith.constant 0 : index
    %0 = vector.load %arg1[%c0, %c0_0] : memref<32x32xf32, #tpu.memory_space<vmem>>, vector<32x32xf32>
    %c0_1 = arith.constant 0 : index
    %c0_2 = arith.constant 0 : index
    %1 = vector.load %arg2[%c0_1, %c0_2] : memref<32x1xi32, #tpu.memory_space<vmem>>, vector<32x1xi32>
    %c0_i32 = arith.constant 0 : i32
    %2 = vector.broadcast %c0_i32 : i32 to vector<32x1xi32>
    %3 = arith.cmpi sge, %1, %2 : vector<32x1xi32>
    %cst = arith.constant dense<0xFF800000> : vector<32xf32>
    %4 = vector.multi_reduction <maximumf>, %0, %cst [1] : vector<32x32xf32> to vector<32xf32>
    %5 = vector.shape_cast %4 : vector<32xf32> to vector<32x1xf32>
    %6 = vector.broadcast %5 : vector<32x1xf32> to vector<32x32xf32>
    %7 = arith.subf %0, %6 : vector<32x32xf32>
    %8 = tpu.iota {dimensions = array<i32: 1>} : vector<32x32xi32>
    %9 = vector.broadcast %1 : vector<32x1xi32> to vector<32x32xi32>
    %10 = arith.cmpi eq, %8, %9 : vector<32x32xi32>
    %cst_3 = arith.constant 0.000000e+00 : f32
    %11 = vector.broadcast %cst_3 : f32 to vector<32x32xf32>
    %12 = arith.select %10, %7, %11 : vector<32x32xi1>, vector<32x32xf32>
    %13 = math.exp %7 : vector<32x32xf32>
    %cst_4 = arith.constant dense<0.000000e+00> : vector<32xf32>
    %14 = vector.multi_reduction <add>, %13, %cst_4 [1] : vector<32x32xf32> to vector<32xf32>
    %15 = vector.shape_cast %14 : vector<32xf32> to vector<32x1xf32>
    %cst_5 = arith.constant dense<0.000000e+00> : vector<32xf32>
    %16 = vector.multi_reduction <add>, %12, %cst_5 [1] : vector<32x32xf32> to vector<32xf32>
    %17 = vector.shape_cast %16 : vector<32xf32> to vector<32x1xf32>
    %18 = math.log %15 : vector<32x1xf32>
    %19 = arith.subf %18, %17 : vector<32x1xf32>
    %cst_6 = arith.constant 0.000000e+00 : f32
    %20 = vector.broadcast %cst_6 : f32 to vector<32x1xf32>
    %21 = arith.select %3, %19, %20 : vector<32x1xi1>, vector<32x1xf32>
    %22 = vector.shape_cast %21 : vector<32x1xf32> to vector<1x32x1xf32>
    %cst_7 = arith.constant dense<0.000000e+00> : vector<1xf32>
    %23 = vector.multi_reduction <add>, %22, %cst_7 [1, 2] : vector<1x32x1xf32> to vector<1xf32>
    %24 = vector.shape_cast %23 : vector<1xf32> to vector<1x1x1xf32>
    %25 = vector.extract %24[0, 0, 0] : f32 from vector<1x1x1xf32>
    %26 = vector.broadcast %25 : f32 to vector<1x1x128xf32>
    %c0_8 = arith.constant 0 : index
    %c0_9 = arith.constant 0 : index
    %c0_10 = arith.constant 0 : index
    %27 = vector.load %arg3[%c0_8, %c0_9, %c0_10] : memref<1x1x128xf32, #tpu.memory_space<vmem>>, vector<1x1x128xf32>
    tpu.vector_store %arg3[%c0_8, %c0_9, %c0_10], %26 {strides = array<i32>} : memref<1x1x128xf32, #tpu.memory_space<vmem>>, vector<1x1x128xf32>,
    return
  }
  func.func @transform_0(%arg0: i32) -> (i32, i32) {
    %c0_i32 = arith.constant 0 : i32
    %c0_i32_0 = arith.constant 0 : i32
    return %arg0, %c0_i32 : i32, i32
  }
  func.func @transform_1(%arg0: i32) -> (i32, i32) {
    %c0_i32 = arith.constant 0 : i32
    %c0_i32_0 = arith.constant 0 : i32
    return %arg0, %c0_i32 : i32, i32
  }
  func.func @transform_2(%arg0: i32) -> (i32, i32, i32) {
    %c0_i32 = arith.constant 0 : i32
    %c0_i32_0 = arith.constant 0 : i32
    %c0_i32_1 = arith.constant 0 : i32
    return %arg0, %c0_i32, %c0_i32_0 : i32, i32, i32
  }
}

</mosaic_0001>

<bundles_post_ra>
// kernel: sequence_cross_entropy_loss.1
= control target key start
LH: loop header
LB: loop body
LE: loop exit
PB: predicated region body
PF: predicated region fallthrough
CT: control target
= control target key end

     0   :  { %vm23_vm0 = vcmask 261120   ;;  %v154_v3 = vmov 0   ;;  %v40_v26 = vlaneseq  ;;  %vm110_vm8 = vcmask 7168   ;;  %s225_s0 = inlined_call_operand.vmem [shape: f32[16,32], index: 0, kind: input, shape index: {}]   ;;  %s226_s1 = inlined_call_operand.vmem [shape: s32[32,1], index: 1, kind: input, shape index: {}]   ;;  %s227_s2 = inlined_call_operand.vmem [shape: f32[1,1,128], index: 2, kind: output, shape index: {}]  }
   0x1   :  { %v13_v0 = vld [vmem:[%s225_s0 + $0x10] sm:$0xff]  ;;  %v11_v1 = vld [vmem:[%s225_s0] sm:$0xff]  ;;  %v14_v2 = vld [vmem:[%s225_s0 + $0x18] sm:$0xff]  ;;  %137 = vset.pattern.permute.xlu1 %v154_v3  ;;  %136 = vset.pattern.permute.xlu0 %v154_v3 }
   0x2   :  { %v30_v4 = vsel %vm23_vm0, %v13_v0, -inf  ;;  %v24_v5 = vsel %vm23_vm0, %v11_v1, -inf  ;;  %v12_v6 = vld [vmem:[%s225_s0 + $0x8] sm:$0xff]  ;;  %v33_v7 = vsel %vm23_vm0, %v14_v2, -inf  ;;  %v195_v10 = vld [vmem:[%s226_s1 + $0x10] sm:$0xff]  ;;  %v200_v11 = vld [vmem:[%s226_s1] sm:$0xff] }
   0x3   :  { %31 = vmax.xlane.f32.xlu1 %v30_v4  ;;  %25 = vmax.xlane.f32.xlu0 %v24_v5  ;;  %v27_v8 = vsel %vm23_vm0, %v12_v6, -inf  ;;  %v189_v9 = vld [vmem:[%s226_s1 + $0x8] sm:$0xff]  ;;  %v207_v12 = vld [vmem:[%s226_s1 + $0x18] sm:$0xff]  ;;  %v41_v30 = vand.u32 127, %v40_v26  ;;  %vm19_vm5 = vcmp.ge.s32.totalorder %v200_v11, 0  ;;  %vm21_vm7 = vcmp.ge.s32.totalorder %v195_v10, 0 }
   0x4   :  { %vm20_vm6 = vcmp.ge.s32.totalorder %v189_v9, 0  ;;  %vm22_vm9 = vcmp.ge.s32.totalorder %v207_v12, 0 }
   0x7   :  { %34 = vmax.xlane.f32.xlu1 %v33_v7  ;;  %28 = vmax.xlane.f32.xlu0 %v27_v8 }
  0x18   :  { %46 = vperm.xlu1 %137, %v189_v9  }
  0x1c   :  { %49 = vperm.xlu1 %137, %v195_v10  }
  0x1d   :  { %43 = vperm.xlu0 %136, %v200_v11  }
  0x20   :  { %52 = vperm.xlu1 %137, %v207_v12  }
  0x90   :  { %v32_v13 = vpop.xlane.xlu1 %31  ;;  %v26_v14 = vpop.xlane.xlu0 %25 }
  0x91   :  { %v38_v15 = vsub.f32 %v13_v0, %v32_v13  ;;  %v36_v16 = vsub.f32 %v11_v1, %v26_v14 }
  0x93   :  { %v66_v17 = vmul.f32 1.442695, %v38_v15  ;;  %v62_v18 = vmul.f32 1.442695, %v36_v16 }
  0x94   :  { %v35_v19 = vpop.xlane.xlu1 %34  ;;  %v29_v20 = vpop.xlane.xlu0 %28 }
  0x95   :  { %138 = vpow2.f32 %v66_v17  ;;  %v39_v21 = vsub.f32 %v14_v2, %v35_v19  ;;  %v37_v22 = vsub.f32 %v12_v6, %v29_v20 }
  0x96   :  { %140 = vpow2.f32 %v62_v18 }
  0x97   :  { %v68_v23 = vmul.f32 1.442695, %v39_v21  ;;  %v64_v24 = vmul.f32 1.442695, %v37_v22 }
  0x98   :  { %v47_v25 = vpop.permute.xlu1 %46 }
  0x99   :  { %142 = vpow2.f32 %v68_v23  ;;  %vm55_vm3 = vcmp.eq.s32.totalorder %v41_v30, %v47_v25 }
  0x9a   :  { %144 = vpow2.f32 %v64_v24  ;;  %v59_v43 = vsel %vm55_vm3, %v37_v22, 0.0 }
  0x9b   :  { %v85_v44 = vsel %vm23_vm0, %v59_v43, 0.0 }
  0x9c   :  { %v50_v29 = vpop.permute.xlu1 %49  ;;  %v44_v35 = vpop.permute.xlu0 %43 }
  0x9d   :  { %vm56_vm1 = vcmp.eq.s32.totalorder %v41_v30, %v50_v29  ;;  %vm54_vm2 = vcmp.eq.s32.totalorder %v41_v30, %v44_v35 }
  0x9e   :  { %v60_v37 = vsel %vm56_vm1, %v38_v15, 0.0  ;;  %v58_v40 = vsel %vm54_vm2, %v36_v16, 0.0 }
  0x9f   :  { %v139_v27 = vpop.eup %138  ;;  %v88_v39 = vsel %vm23_vm0, %v60_v37, 0.0  ;;  %v82_v42 = vsel %vm23_vm0, %v58_v40, 0.0 }
  0xa0   :  { %v141_v28 = vpop.eup %140  ;;  %v76_v33 = vsel %vm23_vm0, %v139_v27, 0.0  ;;  %v53_v41 = vpop.permute.xlu1 %52 }
  0xa1   :  { %v70_v31 = vsel %vm23_vm0, %v141_v28, 0.0  ;;  %vm57_vm4 = vcmp.eq.s32.totalorder %v41_v30, %v53_v41 }
  0xa2   :  { %71 = vadd.xlane.f32.xlu1 %v70_v31  ;;  %v61_v45 = vsel %vm57_vm4, %v39_v21, 0.0 }
  0xa3   :  { %v143_v32 = vpop.eup %142  ;;  %v91_v46 = vsel %vm23_vm0, %v61_v45, 0.0 }
  0xa4   :  { %v145_v34 = vpop.eup %144  ;;  %v79_v38 = vsel %vm23_vm0, %v143_v32, 0.0 }
  0xa5   :  { %v73_v36 = vsel %vm23_vm0, %v145_v34, 0.0 }
  0xa6   :  { %77 = vadd.xlane.f32.xlu1 %v76_v33  ;;  %74 = vadd.xlane.f32.xlu0 %v73_v36 }
  0xaa   :  { %80 = vadd.xlane.f32.xlu1 %v79_v38  ;;  %89 = vadd.xlane.f32.xlu0 %v88_v39 }
  0xae   :  { %83 = vadd.xlane.f32.xlu1 %v82_v42 }
  0xb2   :  { %86 = vadd.xlane.f32.xlu1 %v85_v44 }
  0xb6   :  { %92 = vadd.xlane.f32.xlu1 %v91_v46 }
 0x12f   :  { %v72_v47 = vpop.xlane.xlu1 %71 }
 0x130   :  { %146 = vlog2.f32 %v72_v47 }
 0x133   :  { %v78_v48 = vpop.xlane.xlu1 %77  ;;  %v75_v49 = vpop.xlane.xlu0 %74 }
 0x134   :  { %148 = vlog2.f32 %v78_v48 }
 0x135   :  { %150 = vlog2.f32 %v75_v49 }
 0x137   :  { %v81_v50 = vpop.xlane.xlu1 %80  ;;  %v90_v59 = vpop.xlane.xlu0 %89 }
 0x138   :  { %152 = vlog2.f32 %v81_v50 }
 0x13a   :  { %v147_v51 = vpop.eup %146 }
 0x13b   :  { %v95_v52 = vmul.f32 0.6931472, %v147_v51  ;;  %v84_v53 = vpop.xlane.xlu1 %83 }
 0x13d   :  { %v102_v55 = vsub.f32 %v95_v52, %v84_v53 }
 0x13e   :  { %v149_v54 = vpop.eup %148 }
 0x13f   :  { %v151_v56 = vpop.eup %150  ;;  %v99_v57 = vmul.f32 0.6931472, %v149_v54  ;;  %v87_v58 = vpop.xlane.xlu1 %86  ;;  %v106_v63 = vsel %vm19_vm5, %v102_v55, 0.0 }
 0x140   :  { %v97_v60 = vmul.f32 0.6931472, %v151_v56  ;;  %v111_v5 = vsel %vm110_vm8, %v106_v63, 0.0 }
 0x141   :  { %v104_v61 = vsub.f32 %v99_v57, %v90_v59 }
 0x142   :  { %v153_v62 = vpop.eup %152  ;;  %v103_v0 = vsub.f32 %v97_v60, %v87_v58 }
 0x143   :  { %v101_v1 = vmul.f32 0.6931472, %v153_v62  ;;  %v93_v2 = vpop.xlane.xlu1 %92  ;;  %v108_v3 = vsel %vm21_vm7, %v104_v61, 0.0 }
 0x144   :  { %v107_v4 = vsel %vm20_vm6, %v103_v0, 0.0  ;;  %v114_v11 = vsel %vm110_vm8, %v108_v3, 0.0 }
 0x145   :  { %v112_v6 = vsel %vm110_vm8, %v107_v4, 0.0  ;;  %v105_v7 = vsub.f32 %v101_v1, %v93_v2 }
 0x146   :  { %v113_v8 = vadd.f32 %v112_v6, %v111_v5 }
 0x147   :  { %v109_v13 = vsel %vm22_vm9, %v105_v7, 0.0 }
 0x148   :  { %v115_v9 = vadd.f32 %v114_v11, %v113_v8  ;;  %v116_v14 = vsel %vm110_vm8, %v109_v13, 0.0 }
 0x14a   :  { %v117_v10 = vadd.f32 %v116_v14, %v115_v9 }
 0x14c   :  { %118 = vadd.xlane.f32.xlu0 %v117_v10 }
 0x1d9   :  { %v119_v15 = vpop.xlane.xlu0 %118 }
 0x1da   :  { %v120_v16 = vrot.slane %v119_v15, 4 }
 0x1dc   :  { %v121_v17 = vadd.f32 %v120_v16, %v119_v15 }
 0x1de   :  { %v122_v18 = vrot.slane %v121_v17, 2 }
 0x1e0   :  { %v123_v19 = vadd.f32 %v122_v18, %v121_v17 }
 0x1e2   :  { %v124_v20 = vrot.slane %v123_v19, 1 }
 0x1e4   :  { %v125_v21 = vadd.f32 %v124_v20, %v123_v19 }
 0x1e6   :  { %133 = vpush %v125_v21 }
 0x217   :  { %s134_s1 = spop %133 }
 0x218   :  { %v127_v12 = vstv %s134_s1 }
 0x219   :  { %128 = vst [vmem:[%s227_s2] sm:$0x1] %v127_v12 }

</bundles_post_ra>
